<compile_context>
chip_gen: v5e
topology: v5e:2x2
jax: 0.10.0
libtpu: 0.0.40
codegen_flags: <defaults>
</compile_context>

<pallas_src>
import functools

import numpy as np
import jax
import jax.numpy as jnp
from jax.experimental import pallas as pl
from jax.experimental.pallas import tpu as pltpu


# --------------------------------------------------------------------------
# Pallas kernel: fused, K-tiled (x @ W + b) projection and squared-error
# partial sums (lane-shaped, summed to a scalar outside the kernel).
# --------------------------------------------------------------------------
def _fwd_loss_kernel(x_ref, w_ref, b_ref, y_ref, out_ref, losspart_ref, acc_ref,
                     *, m_valid, apply_row_mask):
    k = pl.program_id(2)

    @pl.when(k == 0)
    def _():
        acc_ref[...] = jnp.zeros_like(acc_ref)

    # MXU: bf16 x bf16 -> f32 accumulation.  W arrives already in bf16 (cast
    # once at parameter creation), so no per-step W cast and half the W bytes.
    acc_ref[...] += jnp.dot(x_ref[...].astype(jnp.bfloat16), w_ref[...],
                            preferred_element_type=jnp.float32)

    @pl.when(k == pl.num_programs(2) - 1)
    def _():
        h = acc_ref[...] + b_ref[...]                       # (tm, tn) f32, VPU
        out_ref[...] = h.astype(out_ref.dtype)

        # Per-tile squared-error partial folded to a lane-shaped (8, tn) block
        # with plain VPU adds — no per-step reduce-to-scalar, no resident
        # scalar accumulator, so i/j grid axes stay "parallel".
        diff = h - y_ref[...].astype(jnp.float32)
        d2 = diff * diff
        tm, tn = d2.shape
        if apply_row_mask:
            # Ragged last row tile: zero the contribution of rows >= m_valid.
            rows = (pl.program_id(0) * tm
                    + jax.lax.broadcasted_iota(jnp.int32, (tm, 1), 0))
            d2 = jnp.where(rows < m_valid, d2, 0.0)
        part = jnp.sum(d2.reshape(tm // 8, 8, tn), axis=0)  # (8, tn)
        losspart_ref[...] = part.reshape(1, 1, 8, tn)


# --------------------------------------------------------------------------
# Tiling / VMEM planning.
# --------------------------------------------------------------------------
def _round_up(x, m):
    return ((x + m - 1) // m) * m


def _vmem_cap_bytes():
    """Usable scoped-VMEM cap: physical minus headroom (~48 MiB on v7x,
    ~100 MiB on v6e/v5e), never the full physical size."""
    try:
        phys = int(pltpu.get_tpu_info().vmem_capacity_bytes)
    except Exception:
        phys = 64 << 20                      # conservative (v7x-sized) fallback
    return int(min(max(phys - (16 << 20), 16 << 20), 100 << 20))


def _tile_bytes(tm, tn, tk, out_itemsize):
    b = 0
    b += 2 * tm * tk * 4                     # x tiles (f32), double-buffered
    b += 2 * tk * tn * 2                     # W tiles (bf16)
    b += 2 * 8 * tn * 4                      # bias tiles (sublane-padded)
    b += 2 * tm * tn * 4                     # label tiles
    b += 2 * tm * tn * out_itemsize          # output tiles
    b += 2 * 8 * tn * 4                      # loss-partial tiles
    b += tm * tn * 4                         # f32 accumulator scratch
    b += tm * tk * 2                         # in-kernel bf16 cast temp of x
    return b


def _plan_tiling(M, H, out_itemsize, budget):
    """Return (tm, tn, tk, Hc, est_bytes).  Hc is the (possibly 128-padded)
    hidden extent used for W columns / K when column or K tiling is needed."""
    M8 = _round_up(max(M, 1), 8)

    # Path A: bf16 W fully resident (tn = tk = H) -> W streamed from HBM once,
    # no column padding.  tm=1024 is only reachable when the budget allows it
    # (v6e/v5e); on v7x the planner naturally drops to 512/256.
    for tm in (1024, 512, 256, 128, 64, 32, 16, 8):
        tm_eff = min(tm, M8)
        est = _tile_bytes(tm_eff, H, H, out_itemsize)
        if est <= budget:
            return tm_eff, H, H, H, est

    # Path B: tile W's output columns (and K if still needed).  Pad the hidden
    # dim to a multiple of 128 so tiles stay lane-aligned and output stores
    # stay lane-dense; zero-padded rows/cols contribute exactly zero.
    Hp = _round_up(H, 128)
    tn_opts = [t for t in (512, 256, 128) if Hp % t == 0]
    for tm in (512, 256, 128, 64, 32, 16, 8):
        tm_eff = min(tm, M8)
        for tn in tn_opts:
            for tk in [Hp] + tn_opts:        # prefer untiled K, then tile K
                if Hp % tk != 0:
                    continue
                est = _tile_bytes(tm_eff, tn, tk, out_itemsize)
                if est <= budget:
                    return tm_eff, tn, tk, Hp, est

    # Minimal fallback (should not be reached with any sane budget).
    tm_eff = min(8, M8)
    return tm_eff, 128, 128, Hp, _tile_bytes(tm_eff, 128, 128, out_itemsize)


# --------------------------------------------------------------------------
# Wrapper.
# --------------------------------------------------------------------------
def fused_forward_and_loss(x, w, b, label, *, out_dtype=jnp.float32):
    """x:[M,H] f32, w:[H,H] (bf16 preferred), b:[1,H] f32, label:[M,H]
    -> (out:[M,H] out_dtype, loss_partials:[n_i, n_j, 8, tn] f32; sum == SSE)."""
    M, H = x.shape
    assert w.shape == (H, H) and b.shape == (1, H) and label.shape == (M, H)

    w = w.astype(jnp.bfloat16)               # no-op when already stored bf16
    b = b.astype(jnp.float32)
    out_itemsize = jnp.dtype(out_dtype).itemsize

    cap = _vmem_cap_bytes()
    tm, tn, tk, Hc, est_bytes = _plan_tiling(M, H, out_itemsize, cap - (8 << 20))

    if Hc != H:
        # Only in the column/K-tiled path: zero-pad the hidden dim.  Zero K
        # rows/cols of W, zero bias cols and zero label cols give exactly zero
        # extra squared error, so the loss is exact.
        pad = Hc - H
        x = jnp.pad(x, ((0, 0), (0, pad)))
        w = jnp.pad(w, ((0, pad), (0, pad)))
        b = jnp.pad(b, ((0, 0), (0, pad)))
        label = jnp.pad(label, ((0, 0), (0, pad)))

    n_i = pl.cdiv(M, tm)                     # ragged last row tile allowed
    n_j = Hc // tn
    n_k = Hc // tk
    apply_row_mask = (M % tm) != 0

    kernel = functools.partial(_fwd_loss_kernel, m_valid=M,
                               apply_row_mask=apply_row_mask)

    flops = 2 * M * Hc * Hc
    bytes_accessed = int(x.size * 4 + w.size * 2 + b.size * 4 + label.size * 4
                         + M * Hc * out_itemsize + n_i * n_j * 8 * tn * 4)
    vmem_limit = int(min(cap, max(32 << 20, est_bytes + (8 << 20))))

    out, loss_partials = pl.pallas_call(
        kernel,
        out_shape=(
            jax.ShapeDtypeStruct((M, Hc), out_dtype),
            jax.ShapeDtypeStruct((n_i, n_j, 8, tn), jnp.float32),
        ),
        grid_spec=pltpu.PrefetchScalarGridSpec(
            num_scalar_prefetch=0,
            grid=(n_i, n_j, n_k),
            in_specs=[
                pl.BlockSpec((tm, tk), lambda i, j, k: (i, k)),       # x tile
                pl.BlockSpec((tk, tn), lambda i, j, k: (k, j)),       # W tile (bf16)
                pl.BlockSpec((1, tn), lambda i, j, k: (0, j)),        # bias tile
                pl.BlockSpec((tm, tn), lambda i, j, k: (i, j)),       # label tile
            ],
            out_specs=[
                pl.BlockSpec((tm, tn), lambda i, j, k: (i, j)),               # projection
                pl.BlockSpec((1, 1, 8, tn), lambda i, j, k: (i, j, 0, 0)),    # loss partial
            ],
            scratch_shapes=[pltpu.VMEM((tm, tn), jnp.float32)],               # K accumulator
        ),
        compiler_params=pltpu.CompilerParams(
            dimension_semantics=("parallel", "parallel", "arbitrary"),
            vmem_limit_bytes=vmem_limit,
        ),
        cost_estimate=pl.CostEstimate(flops=flops, transcendentals=0,
                                      bytes_accessed=bytes_accessed),
    )(x, w, b, label)

    if Hc != H:
        out = out[:, :H]
    return out, loss_partials


# --------------------------------------------------------------------------
# ModelBase registry/wrapper semantics, mirrored in JAX.
# --------------------------------------------------------------------------
class HParams:
    def __init__(self, **kw):
        self.__dict__.update(kw)


class ModelBase:
    _registry = dict()

    @classmethod
    def register(cls, name):
        ModelBase._registry[name] = cls

    @staticmethod
    def by_name(name):
        return ModelBase._registry[name]

    @staticmethod
    def create(hparams, *args, **kwargs):
        model_cls = ModelBase.by_name(hparams.model)
        return model_cls(hparams, *args, **kwargs)

    def __init__(self, hparams):
        self.init_checkpoint = hparams.init_checkpoint
        self.use_gpu = hparams.use_gpu
        self.fp16 = hparams.fp16
        self.training = False

    def train(self):
        self.training = True

    def eval(self):
        self.training = False

    # Abstract hooks (filled in by the registered subclass below).
    def _create_parameters(self):
        raise NotImplementedError

    def _forward(self, inputs, is_training):
        raise NotImplementedError

    def _collect_metrics(self, inputs, outputs):
        raise NotImplementedError

    def _optimize(self, loss):
        raise NotImplementedError

    def _infer(self, inputs):
        raise NotImplementedError

    def forward(self, inputs, is_training=False):
        if is_training:
            self.train()
        else:
            self.eval()
        outputs = self._forward(inputs, is_training)
        metrics = self._collect_metrics(inputs, outputs)
        loss = metrics["loss"]
        if is_training:
            self._optimize(loss)
        metrics = {k: np.asarray(jax.device_get(v)) for k, v in metrics.items()}
        return metrics

    def infer(self, inputs):
        self.eval()
        results = self._infer(inputs)
        return {name: np.asarray(jax.device_get(results[name])) for name in results}


class UnifiedTransformerLite(ModelBase):
    """Minimal concrete model so ModelBase.forward exercises the Pallas kernel."""

    def __init__(self, hparams):
        super().__init__(hparams)
        self.hidden = hparams.hidden
        self._create_parameters()

    def _create_parameters(self):
        # Deterministic parameter init (synthetic; no checkpoint load).
        # Weight is cast to bf16 ONCE here so the kernel streams bf16 W tiles.
        kw, kb = jax.random.split(jax.random.PRNGKey(42))
        H = self.hidden
        self.weight = (jax.random.normal(kw, (H, H), jnp.float32)
                       / jnp.sqrt(jnp.float32(H))).astype(jnp.bfloat16)
        self.bias = 0.01 * jax.random.normal(kb, (1, H), jnp.float32)

    def _forward(self, inputs, is_training):
        x = inputs["x"]                        # [B, S, H]
        B, S, H = x.shape
        x2d = x.reshape(B * S, H)
        label2d = inputs["label"].reshape(B * S, H)
        out2d, loss_partials = fused_forward_and_loss(
            x2d, self.weight, self.bias, label2d)
        return {"hidden": out2d.reshape(B, S, H), "loss_partials": loss_partials}

    def _collect_metrics(self, inputs, outputs):
        n = jnp.float32(inputs["label"].size)
        loss = jnp.sum(outputs["loss_partials"]) / n    # mean squared error
        return {"loss": loss}

    def _optimize(self, loss):
        # TODO(synk): optimizer step is framework glue (no Pallas equivalent needed).
        pass

    def _infer(self, inputs):
        return {"hidden": self._forward(inputs, is_training=False)["hidden"]}


UnifiedTransformerLite.register("UnifiedTransformer")


if __name__ == "__main__":
    B, S, H = 2, 8, 32                         # small shapes: batch=2, seq=8, hidden=32
    key = jax.random.PRNGKey(0)
    kx, ky = jax.random.split(key)
    x = jax.random.normal(kx, (B, S, H), jnp.float32)
    label = jax.random.normal(ky, (B, S, H), jnp.float32)

    hparams = HParams(model="UnifiedTransformer", init_checkpoint=None,
                      use_gpu=False, fp16=False, hidden=H)
    model = ModelBase.create(hparams)

    inputs = {"x": x, "label": label}

    # Direct kernel run (block on the device results).
    x2d = x.reshape(B * S, H)
    label2d = label.reshape(B * S, H)
    out2d, parts = fused_forward_and_loss(x2d, model.weight, model.bias, label2d)
    jax.block_until_ready((out2d, parts))

    # Full ModelBase.forward path (returns numpy metrics).
    metrics = model.forward(inputs, is_training=False)

    # Cross-check against pure JAX reference using the same bf16-fed MXU math.
    ref_out = jnp.dot(x2d.astype(jnp.bfloat16), model.weight,
                      preferred_element_type=jnp.float32) + model.bias
    ref_loss = jnp.mean((ref_out - label2d) ** 2)
    jax.block_until_ready(ref_loss)

    assert np.allclose(np.asarray(out2d), np.asarray(ref_out),
                       rtol=1e-3, atol=1e-3), "projection mismatch"
    assert np.allclose(metrics["loss"], np.asarray(ref_loss),
                       rtol=1e-3, atol=1e-6), (metrics["loss"], np.asarray(ref_loss))

    print("KERNEL_OK")
</pallas_src>

<mosaic_0001>
module attributes {stable_mosaic.version = 11 : i64} {
  func.func @_fwd_loss_kernel(%arg0: i32, %arg1: i32, %arg2: i32, %arg3: memref<16x32xf32, #tpu.memory_space<vmem>>, %arg4: memref<32x32xbf16, #tpu.memory_space<vmem>>, %arg5: memref<1x32xf32, #tpu.memory_space<vmem>>, %arg6: memref<16x32xf32, #tpu.memory_space<vmem>>, %arg7: memref<16x32xf32, #tpu.memory_space<vmem>>, %arg8: memref<1x1x8x32xf32, #tpu.memory_space<vmem>>, %arg9: memref<16x32xf32, #tpu.memory_space<vmem>>) attributes {dimension_semantics = [#tpu.dimension_semantics<parallel>, #tpu.dimension_semantics<parallel>, #tpu.dimension_semantics<arbitrary>], iteration_bounds = array<i64: 1, 1, 1>, scalar_prefetch = 0 : i64, scratch_operands = 1 : i64, tpu.core_type = #tpu.core_type<tc>, window_params = [{transform_indices = @transform_0, window_bounds = array<i64: 16, 32>}, {transform_indices = @transform_1, window_bounds = array<i64: 32, 32>}, {transform_indices = @transform_2, window_bounds = array<i64: 1, 32>}, {transform_indices = @transform_3, window_bounds = array<i64: 16, 32>}, {transform_indices = @transform_4, window_bounds = array<i64: 16, 32>}, {transform_indices = @transform_5, window_bounds = array<i64: 1, 1, 8, 32>}]} {
    %c0_i32 = arith.constant 0 : i32
    %0 = arith.cmpi eq, %arg2, %c0_i32 : i32
    %1 = arith.extui %0 : i1 to i32
    %c0_i32_0 = arith.constant 0 : i32
    %2 = arith.cmpi ne, %1, %c0_i32_0 : i32
    scf.if %2 {
      %cst_10 = arith.constant 0.000000e+00 : f32
      %13 = vector.broadcast %cst_10 : f32 to vector<16x32xf32>
      %c0_11 = arith.constant 0 : index
      %c0_12 = arith.constant 0 : index
      %14 = vector.load %arg9[%c0_11, %c0_12] : memref<16x32xf32, #tpu.memory_space<vmem>>, vector<16x32xf32>
      tpu.vector_store %arg9[%c0_11, %c0_12], %13 {strides = array<i32>} : memref<16x32xf32, #tpu.memory_space<vmem>>, vector<16x32xf32>,
    } else {
    }
    %c0 = arith.constant 0 : index
    %c0_1 = arith.constant 0 : index
    %3 = vector.load %arg9[%c0, %c0_1] : memref<16x32xf32, #tpu.memory_space<vmem>>, vector<16x32xf32>
    %c0_2 = arith.constant 0 : index
    %c0_3 = arith.constant 0 : index
    %4 = vector.load %arg3[%c0_2, %c0_3] : memref<16x32xf32, #tpu.memory_space<vmem>>, vector<16x32xf32>
    %5 = arith.truncf %4 : vector<16x32xf32> to vector<16x32xbf16>
    %c0_4 = arith.constant 0 : index
    %c0_5 = arith.constant 0 : index
    %6 = vector.load %arg4[%c0_4, %c0_5] : memref<32x32xbf16, #tpu.memory_space<vmem>>, vector<32x32xbf16>
    %cst = arith.constant dense<0.000000e+00> : vector<16x32xf32>
    %7 = tpu.matmul %5, %6, %cst {dimension_numbers = #tpu.dot_dimension_numbers<[1], [0], [0], [1], [0, 0, 1, 1], [], []>} : vector<16x32xbf16>, vector<32x32xbf16>, vector<16x32xf32> -> vector<16x32xf32>
    %8 = arith.addf %3, %7 : vector<16x32xf32>
    %c0_6 = arith.constant 0 : index
    %c0_7 = arith.constant 0 : index
    %9 = vector.load %arg9[%c0_6, %c0_7] : memref<16x32xf32, #tpu.memory_space<vmem>>, vector<16x32xf32>
    tpu.vector_store %arg9[%c0_6, %c0_7], %8 {strides = array<i32>} : memref<16x32xf32, #tpu.memory_space<vmem>>, vector<16x32xf32>,
    %c0_i32_8 = arith.constant 0 : i32
    %10 = arith.cmpi eq, %arg2, %c0_i32_8 : i32
    %11 = arith.extui %10 : i1 to i32
    %c0_i32_9 = arith.constant 0 : i32
    %12 = arith.cmpi ne, %11, %c0_i32_9 : i32
    scf.if %12 {
      %c0_10 = arith.constant 0 : index
      %c0_11 = arith.constant 0 : index
      %13 = vector.load %arg9[%c0_10, %c0_11] : memref<16x32xf32, #tpu.memory_space<vmem>>, vector<16x32xf32>
      %c0_12 = arith.constant 0 : index
      %c0_13 = arith.constant 0 : index
      %14 = vector.load %arg5[%c0_12, %c0_13] : memref<1x32xf32, #tpu.memory_space<vmem>>, vector<1x32xf32>
      %15 = vector.broadcast %14 : vector<1x32xf32> to vector<16x32xf32>
      %16 = arith.addf %13, %15 : vector<16x32xf32>
      %c0_14 = arith.constant 0 : index
      %c0_15 = arith.constant 0 : index
      %17 = vector.load %arg7[%c0_14, %c0_15] : memref<16x32xf32, #tpu.memory_space<vmem>>, vector<16x32xf32>
      tpu.vector_store %arg7[%c0_14, %c0_15], %16 {strides = array<i32>} : memref<16x32xf32, #tpu.memory_space<vmem>>, vector<16x32xf32>,
      %c0_16 = arith.constant 0 : index
      %c0_17 = arith.constant 0 : index
      %18 = vector.load %arg6[%c0_16, %c0_17] : memref<16x32xf32, #tpu.memory_space<vmem>>, vector<16x32xf32>
      %19 = arith.subf %16, %18 : vector<16x32xf32>
      %20 = arith.mulf %19, %19 : vector<16x32xf32>
      %21 = vector.shape_cast %20 : vector<16x32xf32> to vector<2x8x32xf32>
      %cst_18 = arith.constant dense<0.000000e+00> : vector<8x32xf32>
      %22 = vector.multi_reduction <add>, %21, %cst_18 [0] : vector<2x8x32xf32> to vector<8x32xf32>
      %23 = vector.shape_cast %22 : vector<8x32xf32> to vector<1x1x8x32xf32>
      %c0_19 = arith.constant 0 : index
      %c0_20 = arith.constant 0 : index
      %c0_21 = arith.constant 0 : index
      %c0_22 = arith.constant 0 : index
      %24 = vector.load %arg8[%c0_19, %c0_20, %c0_21, %c0_22] : memref<1x1x8x32xf32, #tpu.memory_space<vmem>>, vector<1x1x8x32xf32>
      tpu.vector_store %arg8[%c0_19, %c0_20, %c0_21, %c0_22], %23 {strides = array<i32>} : memref<1x1x8x32xf32, #tpu.memory_space<vmem>>, vector<1x1x8x32xf32>,
    } else {
    }
    return
  }
  func.func @transform_0(%arg0: i32, %arg1: i32, %arg2: i32) -> (i32, i32) {
    %c0_i32 = arith.constant 0 : i32
    return %arg0, %arg2 : i32, i32
  }
  func.func @transform_1(%arg0: i32, %arg1: i32, %arg2: i32) -> (i32, i32) {
    %c0_i32 = arith.constant 0 : i32
    return %arg2, %arg1 : i32, i32
  }
  func.func @transform_2(%arg0: i32, %arg1: i32, %arg2: i32) -> (i32, i32) {
    %c0_i32 = arith.constant 0 : i32
    %c0_i32_0 = arith.constant 0 : i32
    return %c0_i32, %arg1 : i32, i32
  }
  func.func @transform_3(%arg0: i32, %arg1: i32, %arg2: i32) -> (i32, i32) {
    %c0_i32 = arith.constant 0 : i32
    return %arg0, %arg1 : i32, i32
  }
  func.func @transform_4(%arg0: i32, %arg1: i32, %arg2: i32) -> (i32, i32) {
    %c0_i32 = arith.constant 0 : i32
    return %arg0, %arg1 : i32, i32
  }
  func.func @transform_5(%arg0: i32, %arg1: i32, %arg2: i32) -> (i32, i32, i32, i32) {
    %c0_i32 = arith.constant 0 : i32
    %c0_i32_0 = arith.constant 0 : i32
    %c0_i32_1 = arith.constant 0 : i32
    return %arg0, %arg1, %c0_i32, %c0_i32_0 : i32, i32, i32, i32
  }
}

</mosaic_0001>

<bundles_post_ra>
// kernel: tpu_custom_call.1
= control target key start
LH: loop header
LB: loop body
LE: loop exit
PB: predicated region body
PF: predicated region fallthrough
CT: control target
= control target key end

     0   :  { %11 = vsyncpa [#allocation4], 0  ;;  %s405_s0 = inlined_call_operand.hbm [shape: f32[16,32], index: 0, kind: input, shape index: {}]   ;;  %s406_s1 = inlined_call_operand.hbm [shape: bf16[32,32], index: 1, kind: input, shape index: {}]   ;;  %s407_s2 = inlined_call_operand.vmem [shape: f32[1,32], index: 2, kind: input, shape index: {}]   ;;  %s408_s3 = inlined_call_operand.hbm [shape: f32[16,32], index: 3, kind: input, shape index: {}]   ;;  %s409_s4 = inlined_call_operand.hbm [shape: f32[16,32], index: 4, kind: output, shape index: {0}]   ;;  %s410_s5 = inlined_call_operand.hbm [shape: f32[1,1,8,32], index: 5, kind: output, shape index: {1}]  }
   0x1   :  { %12 = vsyncpa [#allocation7], 0 }
   0x2   :  { %13 = vsyncpa [#allocation5], 0  ;;  %s32_s20 = sshll.u32 %s406_s1, 4  ;;  %s33_s20 = int_to_ptr.hbm [resolvable:$true] %s32_s20 }
   0x3   :  { %14 = vsyncpa [#allocation11], 0  ;;  %s328_s21 = smov [#allocation6]   ;;  %s19_s25 = sshll.u32 %s405_s0, 4  ;;  %s20_s25 = int_to_ptr.hbm [resolvable:$true] %s19_s25 }
   0x4   :  { %s34_s22 = sshll.u32 %s328_s21, 4  ;;  %s329_s26 = smov 64   ;;  %s35_s22 = int_to_ptr.vmem [resolvable:$true] %s34_s22 }
   0x5   :  { %s330_s27 = smov 4   ;;  %s331_s28 = smov [#allocation3]  }
   0x6   :  { %40 = dma.hbm_to_vmem [thread:$0]  %s33_s20, 256, %s35_s22, [#allocation7], %s329_s26, %s329_s26, %s330_s27  }
   0x7   :  { %s21_s29 = sshll.u32 %s331_s28, 4  ;;  %s332_s30 = smov 128   ;;  %s22_s29 = int_to_ptr.vmem [resolvable:$true] %s21_s29 }
   0x8   :  { %s333_s6 = smov 8   ;;  %s47_s8 = sshll.u32 %s408_s3, 4  ;;  %s48_s8 = int_to_ptr.hbm [resolvable:$true] %s47_s8 }
   0x9   :  { %27 = dma.hbm_to_vmem [thread:$0]  %s20_s25, 256, %s22_s29, [#allocation4], %s332_s30, %s332_s30, %s333_s6  }
   0xa   :  { %s334_s9 = smov [#allocation8]  }
   0xb   :  { %s49_s0 = sshll.u32 %s334_s9, 4  ;;  %s50_s0 = int_to_ptr.vmem [resolvable:$true] %s49_s0 }
   0xc   :  { %55 = dma.hbm_to_vmem [thread:$0]  %s48_s8, 256, %s50_s0, [#allocation7], %s332_s30, %s332_s30, %s333_s6  }
   0xd   :  { %320 = dma.done.wait [#allocation4], 256  }
   0xe   :  { %321 = vsyncadd [#allocation4], 4294967040 }
   0xf   :  { %322 = dma.done.wait [#allocation7], 512  }
  0x10   :  { %323 = vsyncadd [#allocation7], 4294966784  ;;  %vm73_vm0 = vcmask 261120   ;;  %v335_v0 = vmov 0.0   ;;  %v188_v1 = vld [vmem:[#allocation6 + $0x8] sm:$0xff]  ;;  %v187_v2 = vld [vmem:[#allocation6] sm:$0xff] }
  0x11   :  { %74 = vst.msk [vmem:[#allocation2] sm:$0xff] %vm73_vm0, %v335_v0  ;;  %107 = vmatpush.bf16.msra.mxu0 %v188_v1  ;;  %v78_v3 = vld [vmem:[#allocation3] sm:$0xff]  ;;  %v79_v4 = vld [vmem:[#allocation3 + $0x8] sm:$0xff]  ;;  %v199_v10 = vld [vmem:[%s407_s2] ss:$0 sm:$0xff]  ;;  %s336_s11 = smov [#allocation9]  }
  0x12   :  { %75 = vst.msk [vmem:[#allocation2 + $0x8] sm:$0xff] %vm73_vm0, %v335_v0  ;;  %v80_v5 = vpack.c.bf16 %v79_v4, %v78_v3  ;;  %v132_v15 = vld [vmem:[#allocation8] sm:$0xff]  ;;  %s146_s12 = sshll.u32 %s336_s11, 4  ;;  %s148_s15 = sshll.u32 %s409_s4, 4  ;;  %v133_v18 = vld [vmem:[#allocation8 + $0x8] sm:$0xff]  ;;  %s147_s12 = int_to_ptr.vmem [resolvable:$true] %s146_s12  ;;  %s149_s15 = int_to_ptr.hbm [resolvable:$true] %s148_s15 }
  0x13   :  { %s337_s2 = smov [#allocation10]   ;;  %s162_s4 = sshll.u32 %s410_s5, 4  ;;  %s163_s4 = int_to_ptr.hbm [resolvable:$true] %s162_s4 }
  0x14   :  { %s160_s16 = sshll.u32 %s337_s2, 4  ;;  %s161_s16 = int_to_ptr.vmem [resolvable:$true] %s160_s16 }
  0x15   :  { %108 = vmatpush.bf16.msra.mxu0 %v187_v2 }
  0x18   :  { %186 = vmatmul.msk.bf16.vlgmr.msra.gmra.mxu0 %vm73_vm0, %v80_v5  ;;  %v76_v6 = vld [vmem:[#allocation2] sm:$0xff] }
  0x19   :  { %v77_v9 = vld [vmem:[#allocation2 + $0x8] sm:$0xff] }
  0x95   :  { %v110_v7 = vpop.f32.mrf.mxu0 }
  0x96   :  { %v115_v8 = vadd.f32 %v110_v7, %v76_v6 }
  0x98   :  { %117 = vst.msk [vmem:[#allocation2] sm:$0xff] %vm73_vm0, %v115_v8 }
  0x9d   :  { %v112_v11 = vpop.f32.mrf.mxu0 }
  0x9e   :  { %v116_v12 = vadd.f32 %v112_v11, %v77_v9 }
  0x9f   :  { %v122_v13 = vld [vmem:[#allocation2] sm:$0xff] }
  0xa0   :  { %118 = vst.msk [vmem:[#allocation2 + $0x8] sm:$0xff] %vm73_vm0, %v116_v12  ;;  %v128_v14 = vadd.f32 %v199_v10, %v122_v13 }
  0xa2   :  { %130 = vst.msk [vmem:[#allocation9] sm:$0xff] %vm73_vm0, %v128_v14  ;;  %v134_v16 = vsub.f32 %v128_v14, %v132_v15 }
  0xa4   :  { %v136_v21 = vmul.f32 %v134_v16, %v134_v16 }
  0xa6   :  { %v138_v23 = vsel %vm73_vm0, %v136_v21, 0.0 }
  0xa7   :  { %v123_v17 = vld [vmem:[#allocation2 + $0x8] sm:$0xff] }
  0xa8   :  { %v129_v19 = vadd.f32 %v199_v10, %v123_v17 }
  0xaa   :  { %131 = vst.msk [vmem:[#allocation9 + $0x8] sm:$0xff] %vm73_vm0, %v129_v19  ;;  %v135_v20 = vsub.f32 %v129_v19, %v133_v18 }
  0xab   :  { %154 = dma.vmem_to_hbm [thread:$0]  %s147_s12, 256, %s149_s15, [#allocation5], %s332_s30, %s332_s30, %s333_s6  }
  0xac   :  { %v137_v22 = vmul.f32 %v135_v20, %v135_v20 }
  0xae   :  { %v139_v24 = vsel %vm73_vm0, %v137_v22, 0.0 }
  0xaf   :  { %v140_v25 = vadd.f32 %v139_v24, %v138_v23 }
  0xb1   :  { %141 = vst.msk [vmem:[#allocation10] sm:$0xff] %vm73_vm0, %v140_v25 }
  0xb2   :  { %165 = dma.vmem_to_hbm [thread:$0]  %s161_s16, 128, %s163_s4, [#allocation11]  }
  0xb3   :  { %324 = dma.done.wait [#allocation5], 256  }
  0xb4   :  { %325 = vsyncadd [#allocation5], 4294967040 }
  0xb5   :  { %326 = dma.done.wait [#allocation11], 128  }
  0xb6   :  { %327 = vsyncadd [#allocation11], 4294967168 }
  0xb7   :  { %174 = vsyncpa [#allocation4], 1 }
  0xb8   :  { %175 = vsyncpa [#allocation7], 1 }
  0xb9   :  { %176 = vsyncpa [#allocation5], 1 }
  0xba   :  { %177 = vsyncpa [#allocation11], 1 }

</bundles_post_ra>
